<compile_context>
chip_gen: v6e
topology: v6e:2x2x1
jax: 0.10.0
libtpu: 0.0.40
codegen_flags: <defaults>
</compile_context>

<pallas_src>
import functools
import math

import jax
import jax.numpy as jnp
from jax import lax
from jax.experimental import pallas as pl
from jax.experimental.pallas import tpu as pltpu


def _t_kernel(eps, w_ref, q_col_ref, q_row_ref, t_ref):
    """t_i = 2 / sum_j |q_inv_i * (W W^T)_{ij} * |q_j||, written as (cout, 1)."""
    w = w_ref[...].astype(jnp.float32)                          # (cout, cin)
    qa_col = jnp.abs(q_col_ref[...].astype(jnp.float32))        # (cout, 1)
    qa_row = jnp.abs(q_row_ref[...].astype(jnp.float32))        # (1, cout)
    q_inv = 1.0 / (qa_col + eps)                                 # (cout, 1)
    # G = W @ W^T  (contract the embed_dim axis of both operands)
    g = lax.dot_general(w, w, (((1,), (1,)), ((), ())),
                        preferred_element_type=jnp.float32)      # (cout, cout)
    denom = jnp.sum(jnp.abs(q_inv * g * qa_row), axis=1, keepdims=True)
    t_ref[...] = (2.0 / denom).astype(t_ref.dtype)


def _sll_kernel(x_ref, w_ref, b_ref, t_ref, o_ref):
    """out = x - (t * relu(x W^T + b)) W for one batch tile."""
    x = x_ref[...].astype(jnp.float32)                           # (tb, cin)
    w = w_ref[...].astype(jnp.float32)                           # (cout, cin)
    # h = relu(x @ W^T + b)
    h = lax.dot_general(x, w, (((1,), (1,)), ((), ())),
                        preferred_element_type=jnp.float32)      # (tb, cout)
    h = jnp.maximum(h + b_ref[...].astype(jnp.float32), 0.0)
    # res = (t * h) @ W
    ht = h * t_ref[...].astype(jnp.float32)
    res = lax.dot_general(ht, w, (((1,), (0,)), ((), ())),
                          preferred_element_type=jnp.float32)    # (tb, cin)
    o_ref[...] = (x - res).astype(o_ref.dtype)


def _pick_batch_tile(batch, cin, cout, itemsize,
                     vmem_budget=14 * 1024 * 1024, max_rows=1024):
    """Largest dtype-aligned batch tile whose working set fits the VMEM budget."""
    sublane = {4: 8, 2: 16, 1: 32}.get(itemsize, 8)
    # Tile-size independent residents: (double-buffered) weight block + vectors.
    resident = 2 * cout * cin * itemsize + 4 * 4 * cout
    # Per batch row: double-buffered x + out blocks, plus f32 intermediates.
    per_row = 2 * 2 * cin * itemsize + 4 * (2 * cout + cin)
    avail = max(vmem_budget - resident, per_row * sublane)
    tb = (avail // per_row) // sublane * sublane
    tb = int(max(sublane, min(tb, max_rows)))
    # Never exceed the (sublane-padded) batch: tiny inputs -> a single block.
    padded_batch = -(-batch // sublane) * sublane
    return min(tb, padded_batch)


@functools.partial(jax.jit, static_argnames=("epsilon",))
def classification_layer_forward(x, weights, bias, q, *, epsilon=1e-6):
    """ClassificationLayer.forward == SDPBasedLipschitzLinearLayer.forward."""
    B, cin = x.shape
    cout, cin_w = weights.shape
    assert cin_w == cin, "weights must have shape (n_classes, embed_dim)"

    # ---- one-shot T precompute (parameters only) ----------------------------
    q_col = q.reshape(cout, 1)
    q_row = q.reshape(1, cout)
    t_col = pl.pallas_call(
        functools.partial(_t_kernel, float(epsilon)),
        out_shape=jax.ShapeDtypeStruct((cout, 1), jnp.float32),
        grid_spec=pltpu.PrefetchScalarGridSpec(
            num_scalar_prefetch=0,
            grid=(1,),
            in_specs=[pl.BlockSpec((cout, cin), lambda i: (0, 0)),
                      pl.BlockSpec((cout, 1), lambda i: (0, 0)),
                      pl.BlockSpec((1, cout), lambda i: (0, 0))],
            out_specs=pl.BlockSpec((cout, 1), lambda i: (0, 0)),
        ),
    )(weights, q_col, q_row)
    t_row = t_col.reshape(1, cout)
    b_row = bias.reshape(1, cout)

    # ---- batched data path ---------------------------------------------------
    tb = _pick_batch_tile(B, cin, cout, x.dtype.itemsize)
    padded = -(-B // tb) * tb
    x_in = x if padded == B else jnp.zeros((padded, cin), x.dtype).at[:B].set(x)
    grid = (padded // tb,)

    out = pl.pallas_call(
        _sll_kernel,
        out_shape=jax.ShapeDtypeStruct((padded, cin), x.dtype),
        grid_spec=pltpu.PrefetchScalarGridSpec(
            num_scalar_prefetch=0,
            grid=grid,
            in_specs=[pl.BlockSpec((tb, cin), lambda i: (i, 0)),      # x tile
                      pl.BlockSpec((cout, cin), lambda i: (0, 0)),    # W (resident)
                      pl.BlockSpec((1, cout), lambda i: (0, 0)),      # bias
                      pl.BlockSpec((1, cout), lambda i: (0, 0))],     # t
            out_specs=pl.BlockSpec((tb, cin), lambda i: (i, 0)),
        ),
        compiler_params=pltpu.CompilerParams(
            dimension_semantics=("parallel",),
        ),
    )(x_in, weights, b_row, t_row)

    return out if padded == B else out[:B]


def _reference_forward(x, weights, bias, q, epsilon=1e-6):
    hp = lax.Precision.HIGHEST
    res = jnp.maximum(jnp.dot(x, weights.T, precision=hp) + bias[None, :], 0.0)
    q_abs = jnp.abs(q)
    q_inv = 1.0 / (q_abs + epsilon)
    g = jnp.dot(weights, weights.T, precision=hp)
    t = 2.0 / jnp.sum(jnp.abs(q_inv[:, None] * g * q_abs[None, :]), axis=1)
    res = res * t[None, :]
    res = jnp.dot(res, weights, precision=hp)
    return x - res


if __name__ == "__main__":
    batch, embed_dim, n_classes = 12, 128, 32   # small; also exercises batch padding

    key = jax.random.PRNGKey(0)
    kx, kw, kb, kq = jax.random.split(key, 4)

    x = jax.random.normal(kx, (batch, embed_dim), jnp.float32)
    w_std = math.sqrt(2.0 / (embed_dim + n_classes))            # xavier_normal_
    weights = w_std * jax.random.normal(kw, (n_classes, embed_dim), jnp.float32)
    bound = 1.0 / math.sqrt(embed_dim)                          # fan_in uniform bias
    bias = jax.random.uniform(kb, (n_classes,), jnp.float32, minval=-bound, maxval=bound)
    q = jax.random.uniform(kq, (n_classes,), jnp.float32)       # torch.rand(cout)

    out = classification_layer_forward(x, weights, bias, q)
    out = jax.block_until_ready(out)

    ref = _reference_forward(x, weights, bias, q)
    assert out.shape == (batch, embed_dim) and out.dtype == x.dtype
    assert jnp.allclose(out, ref, rtol=1e-2, atol=1e-2), (
        f"max abs err = {jnp.max(jnp.abs(out - ref))}")

    print("KERNEL_OK")
</pallas_src>

<mosaic_0001>
module attributes {stable_mosaic.version = 11 : i64} {
  func.func @_t_kernel(%arg0: i32, %arg1: memref<32x128xf32, #tpu.memory_space<vmem>>, %arg2: memref<32x1xf32, #tpu.memory_space<vmem>>, %arg3: memref<1x32xf32, #tpu.memory_space<vmem>>, %arg4: memref<32x1xf32, #tpu.memory_space<vmem>>) attributes {dimension_semantics = [#tpu.dimension_semantics<arbitrary>], iteration_bounds = array<i64: 1>, scalar_prefetch = 0 : i64, scratch_operands = 0 : i64, tpu.core_type = #tpu.core_type<tc>, window_params = [{pipeline_mode = #tpu.pipeline_mode<synchronous>, transform_indices = @transform_0, window_bounds = array<i64: 32, 128>}, {pipeline_mode = #tpu.pipeline_mode<synchronous>, transform_indices = @transform_1, window_bounds = array<i64: 32, 1>}, {pipeline_mode = #tpu.pipeline_mode<synchronous>, transform_indices = @transform_2, window_bounds = array<i64: 1, 32>}, {pipeline_mode = #tpu.pipeline_mode<synchronous>, transform_indices = @transform_3, window_bounds = array<i64: 32, 1>}]} {
    %c0 = arith.constant 0 : index
    %c0_0 = arith.constant 0 : index
    %0 = vector.load %arg1[%c0, %c0_0] : memref<32x128xf32, #tpu.memory_space<vmem>>, vector<32x128xf32>
    %c0_1 = arith.constant 0 : index
    %c0_2 = arith.constant 0 : index
    %1 = vector.load %arg2[%c0_1, %c0_2] : memref<32x1xf32, #tpu.memory_space<vmem>>, vector<32x1xf32>
    %2 = math.absf %1 : vector<32x1xf32>
    %c0_3 = arith.constant 0 : index
    %c0_4 = arith.constant 0 : index
    %3 = vector.load %arg3[%c0_3, %c0_4] : memref<1x32xf32, #tpu.memory_space<vmem>>, vector<1x32xf32>
    %4 = math.absf %3 : vector<1x32xf32>
    %cst = arith.constant 9.99999997E-7 : f32
    %5 = vector.broadcast %cst : f32 to vector<32x1xf32>
    %6 = arith.addf %2, %5 : vector<32x1xf32>
    %cst_5 = arith.constant 1.000000e+00 : f32
    %7 = vector.broadcast %cst_5 : f32 to vector<32x1xf32>
    %8 = arith.divf %7, %6 : vector<32x1xf32>
    %cst_6 = arith.constant dense<0.000000e+00> : vector<32x32xf32>
    %9 = tpu.matmul %0, %0, %cst_6 {dimension_numbers = #tpu.dot_dimension_numbers<[1], [1], [0], [0], [0, 0, 1, 0], [], []>} : vector<32x128xf32>, vector<32x128xf32>, vector<32x32xf32> -> vector<32x32xf32>
    %10 = vector.broadcast %8 : vector<32x1xf32> to vector<32x32xf32>
    %11 = arith.mulf %10, %9 : vector<32x32xf32>
    %12 = vector.broadcast %4 : vector<1x32xf32> to vector<32x32xf32>
    %13 = arith.mulf %11, %12 : vector<32x32xf32>
    %14 = math.absf %13 : vector<32x32xf32>
    %cst_7 = arith.constant dense<0.000000e+00> : vector<32xf32>
    %15 = vector.multi_reduction <add>, %14, %cst_7 [1] : vector<32x32xf32> to vector<32xf32>
    %16 = vector.shape_cast %15 : vector<32xf32> to vector<32x1xf32>
    %cst_8 = arith.constant 2.000000e+00 : f32
    %17 = vector.broadcast %cst_8 : f32 to vector<32x1xf32>
    %18 = arith.divf %17, %16 : vector<32x1xf32>
    %c0_9 = arith.constant 0 : index
    %c0_10 = arith.constant 0 : index
    %19 = vector.load %arg4[%c0_9, %c0_10] : memref<32x1xf32, #tpu.memory_space<vmem>>, vector<32x1xf32>
    tpu.vector_store %arg4[%c0_9, %c0_10], %18 {strides = array<i32>} : memref<32x1xf32, #tpu.memory_space<vmem>>, vector<32x1xf32>,
    return
  }
  func.func @transform_0(%arg0: i32) -> (i32, i32) {
    %c0_i32 = arith.constant 0 : i32
    %c0_i32_0 = arith.constant 0 : i32
    %c0_i32_1 = arith.constant 0 : i32
    return %c0_i32, %c0_i32_0 : i32, i32
  }
  func.func @transform_1(%arg0: i32) -> (i32, i32) {
    %c0_i32 = arith.constant 0 : i32
    %c0_i32_0 = arith.constant 0 : i32
    %c0_i32_1 = arith.constant 0 : i32
    return %c0_i32, %c0_i32_0 : i32, i32
  }
  func.func @transform_2(%arg0: i32) -> (i32, i32) {
    %c0_i32 = arith.constant 0 : i32
    %c0_i32_0 = arith.constant 0 : i32
    %c0_i32_1 = arith.constant 0 : i32
    return %c0_i32, %c0_i32_0 : i32, i32
  }
  func.func @transform_3(%arg0: i32) -> (i32, i32) {
    %c0_i32 = arith.constant 0 : i32
    %c0_i32_0 = arith.constant 0 : i32
    %c0_i32_1 = arith.constant 0 : i32
    return %c0_i32, %c0_i32_0 : i32, i32
  }
}

module attributes {stable_mosaic.version = 11 : i64} {
  func.func @_sll_kernel(%arg0: i32, %arg1: memref<16x128xf32, #tpu.memory_space<vmem>>, %arg2: memref<32x128xf32, #tpu.memory_space<vmem>>, %arg3: memref<1x32xf32, #tpu.memory_space<vmem>>, %arg4: memref<1x32xf32, #tpu.memory_space<vmem>>, %arg5: memref<16x128xf32, #tpu.memory_space<vmem>>) attributes {dimension_semantics = [#tpu.dimension_semantics<parallel>], iteration_bounds = array<i64: 1>, scalar_prefetch = 0 : i64, scratch_operands = 0 : i64, tpu.core_type = #tpu.core_type<tc>, window_params = [{transform_indices = @transform_0, window_bounds = array<i64: 16, 128>}, {pipeline_mode = #tpu.pipeline_mode<synchronous>, transform_indices = @transform_1, window_bounds = array<i64: 32, 128>}, {pipeline_mode = #tpu.pipeline_mode<synchronous>, transform_indices = @transform_2, window_bounds = array<i64: 1, 32>}, {pipeline_mode = #tpu.pipeline_mode<synchronous>, transform_indices = @transform_3, window_bounds = array<i64: 1, 32>}, {transform_indices = @transform_4, window_bounds = array<i64: 16, 128>}]} {
    %c0 = arith.constant 0 : index
    %c0_0 = arith.constant 0 : index
    %0 = vector.load %arg1[%c0, %c0_0] : memref<16x128xf32, #tpu.memory_space<vmem>>, vector<16x128xf32>
    %c0_1 = arith.constant 0 : index
    %c0_2 = arith.constant 0 : index
    %1 = vector.load %arg2[%c0_1, %c0_2] : memref<32x128xf32, #tpu.memory_space<vmem>>, vector<32x128xf32>
    %cst = arith.constant dense<0.000000e+00> : vector<16x32xf32>
    %2 = tpu.matmul %0, %1, %cst {dimension_numbers = #tpu.dot_dimension_numbers<[1], [1], [0], [0], [0, 0, 1, 0], [], []>} : vector<16x128xf32>, vector<32x128xf32>, vector<16x32xf32> -> vector<16x32xf32>
    %c0_3 = arith.constant 0 : index
    %c0_4 = arith.constant 0 : index
    %3 = vector.load %arg3[%c0_3, %c0_4] : memref<1x32xf32, #tpu.memory_space<vmem>>, vector<1x32xf32>
    %4 = vector.broadcast %3 : vector<1x32xf32> to vector<16x32xf32>
    %5 = arith.addf %2, %4 : vector<16x32xf32>
    %cst_5 = arith.constant 0.000000e+00 : f32
    %6 = vector.broadcast %cst_5 : f32 to vector<16x32xf32>
    %7 = arith.maximumf %5, %6 : vector<16x32xf32>
    %c0_6 = arith.constant 0 : index
    %c0_7 = arith.constant 0 : index
    %8 = vector.load %arg4[%c0_6, %c0_7] : memref<1x32xf32, #tpu.memory_space<vmem>>, vector<1x32xf32>
    %9 = vector.broadcast %8 : vector<1x32xf32> to vector<16x32xf32>
    %10 = arith.mulf %7, %9 : vector<16x32xf32>
    %cst_8 = arith.constant dense<0.000000e+00> : vector<16x128xf32>
    %11 = tpu.matmul %10, %1, %cst_8 {dimension_numbers = #tpu.dot_dimension_numbers<[1], [0], [0], [1], [0, 0, 1, 1], [], []>} : vector<16x32xf32>, vector<32x128xf32>, vector<16x128xf32> -> vector<16x128xf32>
    %12 = arith.subf %0, %11 : vector<16x128xf32>
    %c0_9 = arith.constant 0 : index
    %c0_10 = arith.constant 0 : index
    %13 = vector.load %arg5[%c0_9, %c0_10] : memref<16x128xf32, #tpu.memory_space<vmem>>, vector<16x128xf32>
    tpu.vector_store %arg5[%c0_9, %c0_10], %12 {strides = array<i32>} : memref<16x128xf32, #tpu.memory_space<vmem>>, vector<16x128xf32>,
    return
  }
  func.func @transform_0(%arg0: i32) -> (i32, i32) {
    %c0_i32 = arith.constant 0 : i32
    %c0_i32_0 = arith.constant 0 : i32
    return %arg0, %c0_i32 : i32, i32
  }
  func.func @transform_1(%arg0: i32) -> (i32, i32) {
    %c0_i32 = arith.constant 0 : i32
    %c0_i32_0 = arith.constant 0 : i32
    %c0_i32_1 = arith.constant 0 : i32
    return %c0_i32, %c0_i32_0 : i32, i32
  }
  func.func @transform_2(%arg0: i32) -> (i32, i32) {
    %c0_i32 = arith.constant 0 : i32
    %c0_i32_0 = arith.constant 0 : i32
    %c0_i32_1 = arith.constant 0 : i32
    return %c0_i32, %c0_i32_0 : i32, i32
  }
  func.func @transform_3(%arg0: i32) -> (i32, i32) {
    %c0_i32 = arith.constant 0 : i32
    %c0_i32_0 = arith.constant 0 : i32
    %c0_i32_1 = arith.constant 0 : i32
    return %c0_i32, %c0_i32_0 : i32, i32
  }
  func.func @transform_4(%arg0: i32) -> (i32, i32) {
    %c0_i32 = arith.constant 0 : i32
    %c0_i32_0 = arith.constant 0 : i32
    return %arg0, %c0_i32 : i32, i32
  }
}

</mosaic_0001>

<bundles_post_ra>
// kernel: classification_layer_forward.3
= control target key start
LH: loop header
LB: loop body
LE: loop exit
PB: predicated region body
PF: predicated region fallthrough
CT: control target
= control target key end

     0   :  { %s337_s0 = inlined_call_operand.vmem [shape: f32[16,128], index: 0, kind: input, shape index: {}]   ;;  %s338_s1 = inlined_call_operand.vmem [shape: f32[32,128], index: 1, kind: input, shape index: {}]   ;;  %s339_s2 = inlined_call_operand.vmem [shape: f32[1,32], index: 2, kind: input, shape index: {}]   ;;  %s340_s3 = inlined_call_operand.vmem [shape: f32[1,32], index: 3, kind: input, shape index: {}]   ;;  %s341_s4 = inlined_call_operand.hbm [shape: f32[16,128], index: 4, kind: output, shape index: {}]  }
   0x1   :  { %v23_v0 = vld [vmem:[%s338_s1 + $0x18] sm:$0xff]  ;;  %v22_v1 = vld [vmem:[%s338_s1 + $0x10] sm:$0xff]  ;;  %v18_v2 = vld [vmem:[%s337_s0] sm:$0xff] }
   0x2   :  { %235 = vmatprep.subr.mxu0 %v23_v0  ;;  %246 = vmatprep.subr.mxu1 %v23_v0 }
   0x3   :  { %236 = vmatpush3.xpose.msra.mxu0 %v23_v0  ;;  %243 = vmatprep.mubr.f32.mxu0 %v18_v2 }
   0x4   :  { %9 = vsyncpa [#allocation3], 0  ;;  %237 = vmatprep.subr.mxu0 %v22_v1  ;;  %247 = vmatpush3.msra.mxu1 %v23_v0  ;;  %v21_v3 = vld [vmem:[%s338_s1 + $0x8] sm:$0xff]  ;;  %v20_v4 = vld [vmem:[%s338_s1] sm:$0xff]  ;;  %vm117_vm0 = vcmask 261120  }
   0x5   :  { %248 = vmatprep.subr.mxu1 %v22_v1  ;;  %v19_v5 = vld [vmem:[%s337_s0 + $0x8] sm:$0xff]  ;;  %v219_v6 = vld [vmem:[%s339_s2] ss:$0 sm:$0xff]  ;;  %s282_s0 = smov [#allocation2]  }
   0x6   :  { %249 = vmatpush3.msra.mxu1 %v22_v1  ;;  %v220_v13 = vld [vmem:[%s340_s3] ss:$0 sm:$0xff]  ;;  %s208_s30 = sshll.u32 %s282_s0, 4  ;;  %s209_s30 = int_to_ptr.vmem [resolvable:$true] %s208_s30 }
   0x7   :  { %238 = vmatpush3.xpose.msra.mxu0 %v22_v1  ;;  %250 = vmatprep.subr.mxu1 %v21_v3  ;;  %s260_s2 = scalar_lea.vmem %s209_s30, 256  ;;  %p265_p1 = scmp.lt.s32.totalorder %s209_s30, %s209_s30 }
   0x8   :  { %239 = vmatprep.subr.mxu0 %v21_v3  ;;  %251 = vmatpush3.msra.mxu1 %v21_v3  ;;  %p261_p0 = scmp.ne.s32.totalorder %s209_s30, %s260_s2  ;;  %p266_p2 = scmp.lt.s32.totalorder %s260_s2, %s260_s2 }
   0x9   :  { %252 = vmatprep.subr.mxu1 %v20_v4 }
   0xa   :  { %253 = vmatpush3.msra.mxu1 %v20_v4  ;;  %p267_p3 = por %p266_p2, %p265_p1 }
   0xb   :  { %240 = vmatpush3.xpose.msra.mxu0 %v21_v3 }
   0xc   :  { %241 = vmatprep.subr.mxu0 %v20_v4  ;;  %p268_p4 = pnand %p267_p3, %p261_p0 }
   0xf   :  { %242 = vmatpush3.xpose.msra.mxu0 %v20_v4 }
  0x12   :  { %244 = vmatmul.mubr.f32.vlgmr.msra.gmra.mxu0 %v19_v5 }
  0xd2   :  { %v245_v7 = vpop.f32.mrf.mxu0 }
  0xd3   :  { %v103_v8 = vadd.f32 %v245_v7, %v219_v6 }
  0xd4   :  { %v97_v9 = vpop.f32.mrf.mxu0 }
  0xd5   :  { %v98_v10 = vadd.f32 %v219_v6, %v97_v9  ;;  %v107_v11 = vmax.f32 %v103_v8, 0.0 }
  0xd7   :  { %v106_v12 = vmax.f32 %v98_v10, 0.0  ;;  %v116_v15 = vmul.f32 %v220_v13, %v107_v11 }
  0xd9   :  { %v115_v14 = vmul.f32 %v220_v13, %v106_v12 }
  0xdb   :  { %254 = vmatprep.mubr.msk.f32.mxu1 %vm117_vm0, %v115_v14 }
  0xdc   :  { %255 = vmatmul.mubr.msk.f32.vlgmr.msra.gmra.mxu1 %vm117_vm0, %v116_v15 }
 0x19c   :  { %v256_v16 = vpop.f32.mrf.mxu1 }
 0x19d   :  { %v200_v17 = vsub.f32 %v19_v5, %v256_v16 }
 0x19e   :  { %v190_v18 = vpop.f32.mrf.mxu1 }
 0x19f   :  { %202 = vst [vmem:[#allocation2 + $0x8] sm:$0xff] %v200_v17  ;;  %v199_v19 = vsub.f32 %v18_v2, %v190_v18 }
 0x1a1   :  { %201 = vst [vmem:[#allocation2] sm:$0xff] %v199_v19 }
 0x1a2   :  { %271 = shalt.err (!%p268_p4)
}
 0x1a3   :  { %s283_s3 = smov 128   ;;  %s284_s5 = smov 8  }
 0x1a4   :  { %214 = dma.vmem_to_hbm [thread:$0]  %s209_s30, 256, %s341_s4, [#allocation3], %s283_s3, %s283_s3, %s284_s5  }
 0x1a5   :  { %280 = dma.done.wait [#allocation3], 256  }
 0x1a6   :  { %281 = vsyncadd [#allocation3], 4294967040 }
 0x1a7   :  { %218 = vsyncpa [#allocation3], 1 }

// kernel: classification_layer_forward.2
= control target key start
LH: loop header
LB: loop body
LE: loop exit
PB: predicated region body
PF: predicated region fallthrough
CT: control target
= control target key end

     0   :  { %v242_v2 = vmov 0   ;;  %v150_v21 = vlaneseq  ;;  %vm163_vm0 = vcmask 261120   ;;  %vm184_vm1 = vcmask 7168   ;;  %s302_s0 = inlined_call_operand.vmem [shape: f32[32,128], index: 0, kind: input, shape index: {}]   ;;  %s303_s1 = inlined_call_operand.vmem [shape: f32[32,1], index: 1, kind: input, shape index: {}]   ;;  %s304_s2 = inlined_call_operand.vmem [shape: f32[1,32], index: 2, kind: input, shape index: {}]   ;;  %s305_s3 = inlined_call_operand.vmem [shape: f32[32,1], index: 3, kind: output, shape index: {}]  }
   0x1   :  { %v17_v0 = vld [vmem:[%s302_s0 + $0x18] sm:$0xff]  ;;  %v16_v1 = vld [vmem:[%s302_s0 + $0x10] sm:$0xff]  ;;  %224 = vset.pattern.permute.xlu0 %v242_v2  ;;  %225 = vset.pattern.permute.xlu1 %v242_v2  ;;  %v18_v3 = vld [vmem:[%s303_s1] sm:$0xff] }
   0x2   :  { %201 = vmatprep.subr.mxu0 %v17_v0  ;;  %215 = vmatprep.subr.mxu1 %v17_v0  ;;  %v19_v4 = vld [vmem:[%s303_s1 + $0x8] sm:$0xff]  ;;  %v21_v5 = vld [vmem:[%s303_s1 + $0x18] sm:$0xff]  ;;  %v22_v6 = vand.u32 2147483647, %v18_v3  ;;  %v20_v8 = vld [vmem:[%s303_s1 + $0x10] sm:$0xff]  ;;  %v151_v22 = vshrl.u32 %v150_v21, 7 }
   0x3   :  { %202 = vmatpush3.xpose.msra.mxu0 %v17_v0  ;;  %219 = vmatpush3.xpose.msra.mxu1 %v17_v0  ;;  %v23_v7 = vand.u32 2147483647, %v19_v4  ;;  %v14_v9 = vld [vmem:[%s302_s0] sm:$0xff]  ;;  %v25_v10 = vand.u32 2147483647, %v21_v5  ;;  %v15_v12 = vld [vmem:[%s302_s0 + $0x8] sm:$0xff] }
   0x4   :  { %203 = vmatprep.subr.mxu0 %v16_v1  ;;  %216 = vmatprep.subr.mxu1 %v16_v1  ;;  %v24_v11 = vand.u32 2147483647, %v20_v8  ;;  %v28_v13 = vadd.f32 1e-06, %v22_v6  ;;  %v26_v24 = vld [vmem:[%s304_s2] sm:$0x1] }
   0x5   :  { %209 = vmatprep.mubr.f32.mxu0 %v14_v9  ;;  %212 = vmatprep.mubr.f32.mxu1 %v16_v1  ;;  %v29_v14 = vadd.f32 1e-06, %v23_v7  ;;  %v31_v16 = vadd.f32 1e-06, %v25_v10  ;;  %v27_v26 = vand.u32 2147483647, %v26_v24 }
   0x6   :  { %v30_v15 = vadd.f32 1e-06, %v24_v11  ;;  %226 = vrcp.f32 %v28_v13  ;;  %v152_v27 = vsub.s32 0, %v151_v22 }
   0x7   :  { %204 = vmatpush3.xpose.msra.mxu0 %v16_v1  ;;  %220 = vmatpush3.xpose.msra.mxu1 %v16_v1  ;;  %228 = vrcp.f32 %v29_v14 }
   0x8   :  { %205 = vmatprep.subr.mxu0 %v15_v12  ;;  %217 = vmatprep.subr.mxu1 %v15_v12  ;;  %230 = vrcp.f32 %v30_v15  ;;  %v153_v29 = vrot.slane %v27_v26, %v152_v27 }
   0x9   :  { %232 = vrcp.f32 %v31_v16 }
   0xb   :  { %206 = vmatpush3.xpose.msra.mxu0 %v15_v12  ;;  %221 = vmatpush3.xpose.msra.mxu1 %v15_v12 }
   0xc   :  { %207 = vmatprep.subr.mxu0 %v14_v9  ;;  %218 = vmatprep.subr.mxu1 %v14_v9 }
   0xf   :  { %208 = vmatpush3.xpose.msra.mxu0 %v14_v9  ;;  %222 = vmatpush3.xpose.msra.mxu1 %v14_v9 }
  0x12   :  { %210 = vmatmul.mubr.f32.vlgmr.msra.gmra.mxu0 %v15_v12  ;;  %213 = vmatmul.mubr.f32.vlgmr.msra.gmra.mxu1 %v17_v0 }
  0x13   :  { %v227_v17 = vpop.eup %226 }
  0x14   :  { %127 = vperm.xlu0 %224, %v227_v17   ;;  %v229_v18 = vpop.eup %228 }
  0x15   :  { %v231_v19 = vpop.eup %230 }
  0x16   :  { %137 = vperm.xlu1 %225, %v231_v19   ;;  %v233_v20 = vpop.eup %232 }
  0x18   :  { %132 = vperm.xlu0 %224, %v229_v18  }
  0x1a   :  { %142 = vperm.xlu1 %225, %v233_v20  }
  0x8f   :  { %v128_v23 = vpop.permute.xlu0 %127 }
  0x91   :  { %v138_v25 = vpop.permute.xlu1 %137 }
  0x93   :  { %v133_v28 = vpop.permute.xlu0 %132 }
  0x95   :  { %v143_v33 = vpop.permute.xlu1 %142 }
  0xd2   :  { %v211_v30 = vpop.f32.mrf.mxu0  ;;  %v214_v31 = vpop.f32.mrf.mxu1 }
  0xd3   :  { %v146_v32 = vmul.f32 %v211_v30, %v133_v28  ;;  %v148_v40 = vmul.f32 %v214_v31, %v143_v33 }
  0xd4   :  { %v106_v34 = vpop.f32.mrf.mxu0  ;;  %v116_v35 = vpop.f32.mrf.mxu1 }
  0xd5   :  { %v156_v36 = vmul.f32 %v153_v29, %v146_v32  ;;  %v145_v37 = vmul.f32 %v128_v23, %v106_v34  ;;  %v147_v38 = vmul.f32 %v138_v25, %v116_v35  ;;  %v158_v45 = vmul.f32 %v153_v29, %v148_v40 }
  0xd7   :  { %v155_v39 = vmul.f32 %v153_v29, %v145_v37  ;;  %v157_v41 = vmul.f32 %v153_v29, %v147_v38  ;;  %v160_v42 = vand.u32 2147483647, %v156_v36  ;;  %v162_v49 = vand.u32 2147483647, %v158_v45 }
  0xd9   :  { %v167_v43 = vsel %vm163_vm0, %v160_v42, 0.0  ;;  %v159_v44 = vand.u32 2147483647, %v155_v39  ;;  %v161_v47 = vand.u32 2147483647, %v157_v41  ;;  %v173_v50 = vsel %vm163_vm0, %v162_v49, 0.0 }
  0xda   :  { %168 = vadd.xlane.f32.xlu1 %v167_v43 }
  0xdb   :  { %v164_v46 = vsel %vm163_vm0, %v159_v44, 0.0  ;;  %v170_v48 = vsel %vm163_vm0, %v161_v47, 0.0 }
  0xdc   :  { %165 = vadd.xlane.f32.xlu0 %v164_v46 }
  0xe0   :  { %171 = vadd.xlane.f32.xlu0 %v170_v48 }
  0xe4   :  { %174 = vadd.xlane.f32.xlu0 %v173_v50 }
 0x163   :  { %v169_v51 = vpop.xlane.xlu1 %168 }
 0x164   :  { %234 = vrcp.f32 %v169_v51 }
 0x165   :  { %v166_v52 = vpop.xlane.xlu0 %165 }
 0x166   :  { %236 = vrcp.f32 %v166_v52 }
 0x169   :  { %v172_v53 = vpop.xlane.xlu0 %171 }
 0x16a   :  { %238 = vrcp.f32 %v172_v53 }
 0x16d   :  { %v175_v54 = vpop.xlane.xlu0 %174 }
 0x16e   :  { %240 = vrcp.f32 %v175_v54 }
 0x171   :  { %v235_v55 = vpop.eup %234 }
 0x172   :  { %v179_v56 = vmul.f32 2.0, %v235_v55 }
 0x173   :  { %v237_v57 = vpop.eup %236 }
 0x174   :  { %186 = vst.msk [vmem:[%s305_s3 + $0x8] sm:$0xff] %vm184_vm1, %v179_v56  ;;  %v177_v58 = vmul.f32 2.0, %v237_v57 }
 0x176   :  { %185 = vst.msk [vmem:[%s305_s3] sm:$0xff] %vm184_vm1, %v177_v58 }
 0x177   :  { %v239_v59 = vpop.eup %238 }
 0x178   :  { %v181_v60 = vmul.f32 2.0, %v239_v59 }
 0x17a   :  { %187 = vst.msk [vmem:[%s305_s3 + $0x10] sm:$0xff] %vm184_vm1, %v181_v60 }
 0x17b   :  { %v241_v61 = vpop.eup %240 }
 0x17c   :  { %v183_v62 = vmul.f32 2.0, %v241_v61 }
 0x17e   :  { %188 = vst.msk [vmem:[%s305_s3 + $0x18] sm:$0xff] %vm184_vm1, %v183_v62 }

</bundles_post_ra>
